<compile_context>
chip_gen: v6e
topology: v6e:2x2x1
jax: 0.10.0
libtpu: 0.0.40
codegen_flags: <defaults>
</compile_context>

<pallas_src>
import jax
import jax.numpy as jnp
from jax.experimental import pallas as pl
from jax.experimental.pallas import tpu as pltpu

# ---- configuration: ChannelAttention(channels=64, reduction_rate=16) --------------
B = 2
C = 64
RED = 16
C_RED = C // RED          # 4
H = 16
W = 16
N = H * W                 # 256 (lane-dense last dim)


# ----------------------------- Pallas kernel ---------------------------------------
def channel_attention_kernel(x_ref, p_ref, o_ref):
    # x_ref: (B, C, N); p_ref: (2*C_RED + 2, C) packed [w1 ; w2^T ; b2 ; b1(pad)];
    # o_ref: (B, C, N)
    b = x_ref.shape[0]
    c_red = (p_ref.shape[0] - 2) // 2

    x = x_ref[...]                                      # (B, C, N), input dtype
    xf = x.astype(jnp.float32)                          # f32 for pooled statistics

    # ---- squeeze: global avg + max pool over the spatial (lane) axis --------------
    avg = jnp.mean(xf, axis=-1)                         # (B, C)
    mx = jnp.max(xf, axis=-1)                           # (B, C)
    pooled = jnp.concatenate([avg, mx], axis=0)         # (2B, C): rows [avg_b | mx_b]

    # ---- packed parameters (static ref views, zero runtime cost) ------------------
    w1 = p_ref[0:c_red, :]                              # (C_RED, C)
    w2t = p_ref[c_red:2 * c_red, :]                     # (C_RED, C) == w2.T
    b2 = p_ref[2 * c_red:2 * c_red + 1, :]              # (1, C)
    b1 = p_ref[2 * c_red + 1:2 * c_red + 2, 0:c_red]    # (1, C_RED)

    # ---- shared excitation MLP on all 2B pooled vectors at once -------------------
    # h = pooled @ w1^T  (contract the channel dim of both operands)
    h = jax.lax.dot_general(pooled, w1, (((1,), (1,)), ((), ())),
                            preferred_element_type=jnp.float32)   # (2B, C_RED)
    h = jnp.maximum(h + b1, 0.0)                                   # ReLU
    e = jnp.dot(h, w2t, preferred_element_type=jnp.float32) + b2   # (2B, C)

    # ---- sigmoid(avg_out + max_out), then gate the input --------------------------
    att = jax.nn.sigmoid(e[:b, :] + e[b:, :])           # (B, C)
    o_ref[...] = (att.astype(x.dtype)[:, :, None] * x).astype(o_ref.dtype)


# ----------------------------- wrapper ----------------------------------------------
def channel_attention_pallas(x_nchw, w1, b1, w2, b2):
    b_, c_, h_, w_ = x_nchw.shape
    n_ = h_ * w_
    c_red = w1.shape[0]
    x_flat = x_nchw.reshape(b_, c_, n_)        # NCHW -> (B, C, H*W): free reshape

    # Pack the 4 parameter tensors into a single (2*C_RED + 2, C) f32 buffer:
    #   rows [0, c_red)        : w1    (C_RED, C)
    #   rows [c_red, 2*c_red)  : w2^T  (C_RED, C)
    #   row  2*c_red           : b2    (1, C)
    #   row  2*c_red + 1       : b1 zero-padded to C lanes
    f32 = jnp.float32
    b1_row = jnp.zeros((1, c_), f32).at[0, :c_red].set(b1.astype(f32))
    params = jnp.concatenate(
        [w1.astype(f32), w2.astype(f32).T, b2.astype(f32).reshape(1, c_), b1_row],
        axis=0)

    out = pl.pallas_call(
        channel_attention_kernel,
        out_shape=jax.ShapeDtypeStruct((b_, c_, n_), x_nchw.dtype),
        in_specs=[pl.BlockSpec(memory_space=pltpu.MemorySpace.VMEM),
                  pl.BlockSpec(memory_space=pltpu.MemorySpace.VMEM)],
        out_specs=pl.BlockSpec(memory_space=pltpu.MemorySpace.VMEM),
    )(x_flat, params)
    return out.reshape(b_, c_, h_, w_)


# ----------------------------- plain-JAX NCHW reference ----------------------------
def channel_attention_ref(x, w1, b1, w2, b2):
    avg = jnp.mean(x, axis=(2, 3))                       # (B, C)
    mx = jnp.max(x, axis=(2, 3))                         # (B, C)

    def excite(f):                                       # f: (B, C)
        hid = jnp.maximum(f @ w1.T + b1, 0.0)            # (B, C_RED)
        return hid @ w2.T + b2                           # (B, C)

    att = jax.nn.sigmoid(excite(avg) + excite(mx))       # (B, C)
    return att[:, :, None, None] * x


# --------------------------------------- main ---------------------------------------
if __name__ == "__main__":
    key = jax.random.PRNGKey(0)
    kx, k1, k2, k3, k4 = jax.random.split(key, 5)
    x = jax.random.normal(kx, (B, C, H, W), jnp.float32)

    # excitation weights: Conv2d(C, C//r, 1) and Conv2d(C//r, C, 1), squeezed to 2-D
    w1 = 0.1 * jax.random.normal(k1, (C_RED, C), jnp.float32)   # (Cout, Cin)
    b1 = 0.1 * jax.random.normal(k2, (C_RED,), jnp.float32)
    w2 = 0.1 * jax.random.normal(k3, (C, C_RED), jnp.float32)
    b2 = 0.1 * jax.random.normal(k4, (C,), jnp.float32)

    out = channel_attention_pallas(x, w1, b1, w2, b2)
    out = jax.block_until_ready(out)

    ref = channel_attention_ref(x, w1, b1, w2, b2)
    max_err = float(jnp.max(jnp.abs(out - ref)))
    assert jnp.allclose(out, ref, atol=2e-2, rtol=2e-2), f"max abs err {max_err}"
    print("KERNEL_OK")
</pallas_src>

<mosaic_0001>
module attributes {stable_mosaic.version = 11 : i64} {
  func.func @channel_attention_kernel(%arg0: memref<2x64x256xf32, #tpu.memory_space<vmem>>, %arg1: memref<10x64xf32, #tpu.memory_space<vmem>>, %arg2: memref<2x64x256xf32, #tpu.memory_space<vmem>>) attributes {dimension_semantics = [], scalar_prefetch = 0 : i64, scratch_operands = 0 : i64, tpu.core_type = #tpu.core_type<tc>} {
    %c0 = arith.constant 0 : index
    %c0_0 = arith.constant 0 : index
    %c0_1 = arith.constant 0 : index
    %0 = vector.load %arg0[%c0, %c0_0, %c0_1] : memref<2x64x256xf32, #tpu.memory_space<vmem>>, vector<2x64x256xf32>
    %cst = arith.constant dense<0.000000e+00> : vector<2x64xf32>
    %1 = vector.multi_reduction <add>, %0, %cst [2] : vector<2x64x256xf32> to vector<2x64xf32>
    %cst_2 = arith.constant 2.560000e+02 : f32
    %2 = vector.broadcast %cst_2 : f32 to vector<2x64xf32>
    %3 = arith.divf %1, %2 : vector<2x64xf32>
    %cst_3 = arith.constant dense<0xFF800000> : vector<2x64xf32>
    %4 = vector.multi_reduction <maximumf>, %0, %cst_3 [2] : vector<2x64x256xf32> to vector<2x64xf32>
    %5 = tpu.concatenate %3, %4 in 0 : vector<2x64xf32>, vector<2x64xf32> -> vector<4x64xf32>
    %c0_4 = arith.constant 0 : index
    %c0_5 = arith.constant 0 : index
    %6 = vector.load %arg1[%c0_4, %c0_5] : memref<10x64xf32, #tpu.memory_space<vmem>>, vector<4x64xf32>
    %c4 = arith.constant 4 : index
    %c0_6 = arith.constant 0 : index
    %7 = vector.load %arg1[%c4, %c0_6] : memref<10x64xf32, #tpu.memory_space<vmem>>, vector<4x64xf32>
    %c8 = arith.constant 8 : index
    %c0_7 = arith.constant 0 : index
    %8 = vector.load %arg1[%c8, %c0_7] : memref<10x64xf32, #tpu.memory_space<vmem>>, vector<1x64xf32>
    %c9 = arith.constant 9 : index
    %c0_8 = arith.constant 0 : index
    %9 = vector.load %arg1[%c9, %c0_8] : memref<10x64xf32, #tpu.memory_space<vmem>>, vector<1x4xf32>
    %cst_9 = arith.constant dense<0.000000e+00> : vector<4x4xf32>
    %10 = tpu.matmul %5, %6, %cst_9 {dimension_numbers = #tpu.dot_dimension_numbers<[1], [1], [0], [0], [0, 0, 1, 0], [], []>} : vector<4x64xf32>, vector<4x64xf32>, vector<4x4xf32> -> vector<4x4xf32>
    %11 = vector.broadcast %9 : vector<1x4xf32> to vector<4x4xf32>
    %12 = arith.addf %10, %11 : vector<4x4xf32>
    %cst_10 = arith.constant 0.000000e+00 : f32
    %13 = vector.broadcast %cst_10 : f32 to vector<4x4xf32>
    %14 = arith.maximumf %12, %13 : vector<4x4xf32>
    %cst_11 = arith.constant dense<0.000000e+00> : vector<4x64xf32>
    %15 = tpu.matmul %14, %7, %cst_11 {dimension_numbers = #tpu.dot_dimension_numbers<[1], [0], [0], [1], [0, 0, 1, 1], [], []>} : vector<4x4xf32>, vector<4x64xf32>, vector<4x64xf32> -> vector<4x64xf32>
    %16 = vector.broadcast %8 : vector<1x64xf32> to vector<4x64xf32>
    %17 = arith.addf %15, %16 : vector<4x64xf32>
    %18 = vector.extract_strided_slice %17 {offsets = [0, 0], sizes = [2, 64], strides = [1, 1]} : vector<4x64xf32> to vector<2x64xf32>
    %19 = vector.extract_strided_slice %17 {offsets = [2, 0], sizes = [2, 64], strides = [1, 1]} : vector<4x64xf32> to vector<2x64xf32>
    %20 = arith.addf %18, %19 : vector<2x64xf32>
    %21 = arith.negf %20 : vector<2x64xf32>
    %22 = math.exp %21 : vector<2x64xf32>
    %cst_12 = arith.constant 1.000000e+00 : f32
    %23 = vector.broadcast %cst_12 : f32 to vector<2x64xf32>
    %24 = arith.addf %23, %22 : vector<2x64xf32>
    %25 = arith.divf %23, %24 : vector<2x64xf32>
    %26 = vector.shape_cast %25 : vector<2x64xf32> to vector<2x64x1xf32>
    %27 = vector.broadcast %26 : vector<2x64x1xf32> to vector<2x64x256xf32>
    %28 = arith.mulf %27, %0 : vector<2x64x256xf32>
    %c0_13 = arith.constant 0 : index
    %c0_14 = arith.constant 0 : index
    %c0_15 = arith.constant 0 : index
    %29 = vector.load %arg2[%c0_13, %c0_14, %c0_15] : memref<2x64x256xf32, #tpu.memory_space<vmem>>, vector<2x64x256xf32>
    tpu.vector_store %arg2[%c0_13, %c0_14, %c0_15], %28 {strides = array<i32>} : memref<2x64x256xf32, #tpu.memory_space<vmem>>, vector<2x64x256xf32>,
    return
  }
}

</mosaic_0001>

<bundles_post_ra>
// kernel: tpu_custom_call.1
= control target key start
LH: loop header
LB: loop body
LE: loop exit
PB: predicated region body
PF: predicated region fallthrough
CT: control target
= control target key end

     0   :  { %7 = vsyncpa [#allocation3], 0  ;;  %s1148_s0 = inlined_call_operand.hbm [shape: f32[2,64,256], index: 0, kind: input, shape index: {}]   ;;  %s1149_s1 = inlined_call_operand.hbm [shape: f32[10,64], index: 1, kind: input, shape index: {}]   ;;  %s1150_s2 = inlined_call_operand.hbm [shape: f32[2,64,256], index: 2, kind: output, shape index: {}]  }
   0x1   :  { %8 = vsyncpa [#allocation6], 0 }
   0x2   :  { %9 = vsyncpa [#allocation4], 0  ;;  %s827_s9 = smov [#allocation2]  }
   0x3   :  { %s15_s10 = sshll.u32 %s827_s9, 4  ;;  %s16_s10 = int_to_ptr.vmem [resolvable:$true] %s15_s10 }
   0x4   :  { %s769_s11 = scalar_lea.vmem %s16_s10, 4096  ;;  %p774_p1 = scmp.lt.s32.totalorder %s16_s10, %s16_s10 }
   0x5   :  { %p770_p0 = scmp.ne.s32.totalorder %s16_s10, %s769_s11  ;;  %p775_p2 = scmp.lt.s32.totalorder %s769_s11, %s769_s11 }
   0x7   :  { %p776_p3 = por %p775_p2, %p774_p1 }
   0x9   :  { %p777_p4 = pnand %p776_p3, %p770_p0 }
   0xb   :  { %780 = shalt.err (!%p777_p4)
}
   0xc   :  { %s828_s12 = smov 256   ;;  %s829_s13 = smov 16  }
   0xd   :  { %21 = dma.hbm_to_vmem [thread:$0]  %s1148_s0, 4096, %s16_s10, [#allocation3], %s828_s12, %s828_s12, %s829_s13  }
   0xe   :  { %s830_s16 = smov [#allocation5]  }
   0xf   :  { %s27_s17 = sshll.u32 %s830_s16, 4  ;;  %s28_s17 = int_to_ptr.vmem [resolvable:$true] %s27_s17 }
  0x10   :  { %s789_s18 = scalar_lea.vmem %s28_s17, 256  ;;  %p794_p6 = scmp.lt.s32.totalorder %s28_s17, %s28_s17 }
  0x11   :  { %p790_p5 = scmp.ne.s32.totalorder %s28_s17, %s789_s18  ;;  %p795_p7 = scmp.lt.s32.totalorder %s789_s18, %s789_s18 }
  0x13   :  { %p796_p8 = por %p795_p7, %p794_p6 }
  0x15   :  { %p797_p9 = pnand %p796_p8, %p790_p5 }
  0x17   :  { %800 = shalt.err (!%p797_p9)
}
  0x18   :  { %s831_s19 = smov 128   ;;  %s832_s20 = smov 8  }
  0x19   :  { %33 = dma.hbm_to_vmem [thread:$0]  %s1149_s1, 256, %s28_s17, [#allocation6], %s831_s19, %s831_s19, %s832_s20  }
  0x1a   :  { %821 = dma.done.wait [#allocation3], 4096  }
  0x1b   :  { %822 = vsyncadd [#allocation3], 4294963200 }
  0x1c   :  { %823 = dma.done.wait [#allocation6], 256  }
  0x1d   :  { %824 = vsyncadd [#allocation6], 4294967040  ;;  %v860_v0 = vld [vmem:[#allocation2 + $0x80] sm:$0xff]  ;;  %v862_v1 = vld [vmem:[#allocation2 + $0x88] sm:$0xff]  ;;  %vm405_vm0 = vcmask 523264   ;;  %vm834_vm1 = vmmov 0  }
  0x1e   :  { %v864_v2 = vld [vmem:[#allocation2] sm:$0xff]  ;;  %v96_v3 = vadd.f32 %v862_v1, %v860_v0  ;;  %v868_v4 = vld [vmem:[#allocation2 + $0x8] sm:$0xff]  ;;  %v870_v5 = vld [vmem:[#allocation2 + $0x90] sm:$0xff]  ;;  %v161_v27 = vmax.f32 %v860_v0, %v862_v1  ;;  %vm212_vm2 = vcmask 130112   ;;  %vm219_vm3 = vcmask 195712   ;;  %s835_s0 = smov [#allocation7]  }
  0x1f   :  { %1164 = vst [vmem:[#allocation11_spill] sm:$0xff] %v870_v5  ;;  %v872_v6 = vld [vmem:[#allocation2 + $0x98] sm:$0xff]  ;;  %v72_v7 = vadd.f32 %v868_v4, %v864_v2  ;;  %v876_v8 = vld [vmem:[#allocation2 + $0x10] sm:$0xff]  ;;  %v884_v12 = vld [vmem:[#allocation2 + $0xa0] sm:$0xff]  ;;  %v137_v25 = vmax.f32 %v864_v2, %v868_v4  ;;  %vm226_vm4 = vcmask 261312   ;;  %vm233_vm5 = vcmask 326912  }
  0x20   :  { %1165 = vst [vmem:[#allocation12_spill] sm:$0xff] %v872_v6  ;;  %v878_v9 = vld [vmem:[#allocation2 + $0x18] sm:$0xff]  ;;  %97 = vadd.xlane.f32.xlu1 %v96_v3  ;;  %v99_v10 = vadd.f32 %v872_v6, %v870_v5  ;;  %v886_v13 = vld [vmem:[#allocation2 + $0xa8] sm:$0xff]  ;;  %v888_v14 = vld [vmem:[#allocation2 + $0x20] sm:$0xff]  ;;  %v164_v26 = vmax.f32 %v870_v5, %v872_v6  ;;  %v833_v3 = vmov 0.0   ;;  %vm240_vm6 = vcmask 392512  }
  0x21   :  { %73 = vadd.xlane.f32.xlu0 %v72_v7  ;;  %v75_v11 = vadd.f32 %v878_v9, %v876_v8  ;;  %1166 = vst [vmem:[#allocation13_spill] sm:$0xff] %v886_v13  ;;  %v890_v15 = vld [vmem:[#allocation2 + $0x28] sm:$0xff]  ;;  %v102_v16 = vadd.f32 %v886_v13, %v884_v12  ;;  %v896_v18 = vld [vmem:[#allocation2 + $0xb0] sm:$0xff]  ;;  %v898_v19 = vld [vmem:[#allocation2 + $0xb8] sm:$0xff]  ;;  %v140_v24 = vmax.f32 %v876_v8, %v878_v9  ;;  %vm247_vm7 = vcmask 458112   ;;  %s714_s1 = sshll.u32 %s835_s0, 4  ;;  %s715_s1 = int_to_ptr.vmem [resolvable:$true] %s714_s1 }
  0x22   :  { %v78_v17 = vadd.f32 %v890_v15, %v888_v14  ;;  %1167 = vst [vmem:[#allocation14_spill] sm:$0xff] %v896_v18  ;;  %1168 = vst [vmem:[#allocation15_spill] sm:$0xff] %v898_v19  ;;  %v900_v20 = vld [vmem:[#allocation2 + $0x30] sm:$0xff]  ;;  %v902_v21 = vld [vmem:[#allocation2 + $0x38] sm:$0xff]  ;;  %v105_v22 = vadd.f32 %v898_v19, %v896_v18  ;;  %v167_v34 = vmax.f32 %v884_v12, %v886_v13  ;;  %738 = vmatprep.subr.mxu0 %v833_v3  ;;  %vm254_vm8 = vcmask 523712   ;;  %s801_s23 = scalar_lea.vmem %s715_s1, 4096  ;;  %p806_p11 = scmp.lt.s32.totalorder %s715_s1, %s715_s1 }
  0x23   :  { %v81_v23 = vadd.f32 %v902_v21, %v900_v20  ;;  %v916_v28 = vld [vmem:[#allocation2 + $0xc0] sm:$0xff]  ;;  %v918_v29 = vld [vmem:[#allocation2 + $0xc8] sm:$0xff]  ;;  %v143_v35 = vmax.f32 %v888_v14, %v890_v15  ;;  %v932_v36 = vld [vmem:[#allocation2 + $0xd0] sm:$0xff]  ;;  %v170_v42 = vmax.f32 %v896_v18, %v898_v19  ;;  %v146_v43 = vmax.f32 %v900_v20, %v902_v21  ;;  %743 = vmatprep.subr.mxu1 %v833_v3  ;;  %p802_p10 = scmp.ne.s32.totalorder %s715_s1, %s801_s23  ;;  %p807_p12 = scmp.lt.s32.totalorder %s801_s23, %s801_s23 }
  0x24   :  { %100 = vadd.xlane.f32.xlu1 %v99_v10  ;;  %1169 = vst [vmem:[#allocation16_spill] sm:$0xff] %v916_v28  ;;  %1170 = vst [vmem:[#allocation17_spill] sm:$0xff] %v918_v29  ;;  %v920_v30 = vld [vmem:[#allocation2 + $0x40] sm:$0xff]  ;;  %v922_v31 = vld [vmem:[#allocation2 + $0x48] sm:$0xff]  ;;  %v108_v32 = vadd.f32 %v918_v29, %v916_v28  ;;  %v173_v50 = vmax.f32 %v916_v28, %v918_v29  ;;  %740 = vmatprep.mubr.msk.f32.mxu0 %vm834_vm1, %v833_v3  ;;  %vm295_vm9 = vcmask 1041409   ;;  %vm392_vm10 = vcmask 1043459  }
  0x25   :  { %76 = vadd.xlane.f32.xlu0 %v75_v11  ;;  %v84_v33 = vadd.f32 %v922_v31, %v920_v30  ;;  %1171 = vst [vmem:[#allocation18_spill] sm:$0xff] %v932_v36  ;;  %v934_v37 = vld [vmem:[#allocation2 + $0xd8] sm:$0xff]  ;;  %v936_v38 = vld [vmem:[#allocation2 + $0x50] sm:$0xff]  ;;  %v948_v44 = vld [vmem:[#allocation2 + $0xe0] sm:$0xff]  ;;  %v149_v51 = vmax.f32 %v920_v30, %v922_v31  ;;  %745 = vmatprep.mubr.msk.f32.mxu1 %vm834_vm1, %v833_v3  ;;  %vm395_vm11 = vcmask 1041408   ;;  %vm491_vm12 = vcmask 1043456   ;;  %p808_p13 = por %p807_p12, %p806_p11 }
  0x26   :  { %1172 = vst [vmem:[#allocation19_spill] sm:$0xff] %v934_v37  ;;  %v938_v39 = vld [vmem:[#allocation2 + $0x58] sm:$0xff]  ;;  %v111_v40 = vadd.f32 %v934_v37, %v932_v36  ;;  %1173 = vst [vmem:[#allocation20_spill] sm:$0xff] %v948_v44  ;;  %v950_v45 = vld [vmem:[#allocation2 + $0xe8] sm:$0xff]  ;;  %v176_v58 = vmax.f32 %v932_v36, %v934_v37  ;;  %vm487_vm13 = vcmask 31744  }
  0x27   :  { %v87_v41 = vadd.f32 %v938_v39, %v936_v38  ;;  %1174 = vst [vmem:[#allocation21_spill] sm:$0xff] %v950_v45  ;;  %v952_v46 = vld [vmem:[#allocation2 + $0x60] sm:$0xff]  ;;  %v954_v47 = vld [vmem:[#allocation2 + $0x68] sm:$0xff]  ;;  %v114_v48 = vadd.f32 %v950_v45, %v948_v44  ;;  %v964_v52 = vld [vmem:[#allocation2 + $0xf0] sm:$0xff]  ;;  %v152_v59 = vmax.f32 %v936_v38, %v938_v39  ;;  %v179_v60 = vmax.f32 %v948_v44, %v950_v45  ;;  %p809_p0 = pnand %p808_p13, %p802_p10 }
  0x28   :  { %103 = vadd.xlane.f32.xlu1 %v102_v16  ;;  %v90_v49 = vadd.f32 %v954_v47, %v952_v46  ;;  %1175 = vst [vmem:[#allocation22_spill] sm:$0xff] %v964_v52  ;;  %v966_v53 = vld [vmem:[#allocation2 + $0xf8] sm:$0xff]  ;;  %v968_v54 = vld [vmem:[#allocation2 + $0x70] sm:$0xff]  ;;  %v155_v61 = vmax.f32 %v952_v46, %v954_v47  ;;  %v397_v7 = vld [vmem:[#allocation5] sm:$0xf] }
  0x29   :  { %79 = vadd.xlane.f32.xlu0 %v78_v17  ;;  %1176 = vst [vmem:[#allocation23_spill] sm:$0xff] %v966_v53  ;;  %v970_v55 = vld [vmem:[#allocation2 + $0x78] sm:$0xff]  ;;  %v117_v56 = vadd.f32 %v966_v53, %v964_v52  ;;  %v182_v62 = vmax.f32 %v964_v52, %v966_v53  ;;  %739 = vmatpush3.xpose.msk.msra.mxu0 %vm405_vm0, %v397_v7 }
  0x2a   :  { %v93_v57 = vadd.f32 %v970_v55, %v968_v54  ;;  %v158_v63 = vmax.f32 %v968_v54, %v970_v55 }
  0x2c   :  { %106 = vadd.xlane.f32.xlu1 %v105_v22 }
  0x2d   :  { %82 = vadd.xlane.f32.xlu0 %v81_v23 }
  0x30   :  { %141 = vmax.xlane.f32.xlu1 %v140_v24 }
  0x31   :  { %138 = vmax.xlane.f32.xlu0 %v137_v25 }
  0x34   :  { %165 = vmax.xlane.f32.xlu1 %v164_v26 }
  0x35   :  { %162 = vmax.xlane.f32.xlu0 %v161_v27 }
  0x38   :  { %109 = vadd.xlane.f32.xlu1 %v108_v32 }
  0x39   :  { %85 = vadd.xlane.f32.xlu0 %v84_v33 }
  0x3c   :  { %168 = vmax.xlane.f32.xlu1 %v167_v34 }
  0x3d   :  { %144 = vmax.xlane.f32.xlu0 %v143_v35 }
  0x40   :  { %112 = vadd.xlane.f32.xlu1 %v111_v40 }
  0x41   :  { %88 = vadd.xlane.f32.xlu0 %v87_v41 }
  0x44   :  { %171 = vmax.xlane.f32.xlu1 %v170_v42  ;;  %v201_v42 = vlaneseq }
  0x45   :  { %147 = vmax.xlane.f32.xlu0 %v146_v43 }
  0x48   :  { %115 = vadd.xlane.f32.xlu1 %v114_v48 }
  0x49   :  { %91 = vadd.xlane.f32.xlu0 %v90_v49  ;;  %v202_v49 = vand.u32 127, %v201_v42 }
  0x4b   :  { %v228_v53 = vadd.s32 4294967264, %v202_v49  ;;  %v235_v52 = vadd.s32 4294967256, %v202_v49  ;;  %v242_v44 = vadd.s32 4294967248, %v202_v49 }
  0x4c   :  { %174 = vmax.xlane.f32.xlu1 %v173_v50  ;;  %v1001_v50 = vshrl.u32 %v201_v42, 7 }
  0x4d   :  { %150 = vmax.xlane.f32.xlu0 %v149_v51 }
  0x50   :  { %118 = vadd.xlane.f32.xlu1 %v117_v56  ;;  %v207_v56 = vadd.s32 4294967288, %v202_v49 }
  0x51   :  { %94 = vadd.xlane.f32.xlu0 %v93_v57  ;;  %v214_v57 = vadd.s32 4294967280, %v202_v49 }
  0x53   :  { %v1014_v3 = vsub.s32 %v214_v57, %v1001_v50 }
  0x54   :  { %177 = vmax.xlane.f32.xlu1 %v176_v58 }
  0x55   :  { %153 = vmax.xlane.f32.xlu0 %v152_v59  ;;  %v221_v59 = vadd.s32 4294967272, %v202_v49 }
  0x57   :  { %v1017_v45 = vsub.s32 %v221_v59, %v1001_v50 }
  0x58   :  { %180 = vmax.xlane.f32.xlu1 %v179_v60  ;;  %v1008_v60 = vsub.s32 %v202_v49, %v1001_v50 }
  0x59   :  { %156 = vmax.xlane.f32.xlu0 %v155_v61 }
  0x5c   :  { %183 = vmax.xlane.f32.xlu1 %v182_v62  ;;  %v1011_v62 = vsub.s32 %v207_v56, %v1001_v50 }
  0x5d   :  { %159 = vmax.xlane.f32.xlu0 %v158_v63 }
  0xa9   :  { %v98_v10 = vpop.xlane.xlu1 %97 }
  0xaa   :  { %v74_v11 = vpop.xlane.xlu0 %73  ;;  %v129_v37 = vmul.f32 0.00390625, %v98_v10 }
  0xab   :  { %v121_v19 = vmul.f32 0.00390625, %v74_v11  ;;  %v1029_v11 = vsub.s32 %v235_v52, %v1001_v50 }
  0xad   :  { %v101_v16 = vpop.xlane.xlu1 %100 }
  0xae   :  { %v77_v17 = vpop.xlane.xlu0 %76  ;;  %v130_v63 = vmul.f32 0.00390625, %v101_v16  ;;  %v249_v16 = vadd.s32 4294967240, %v202_v49 }
  0xaf   :  { %v122_v42 = vmul.f32 0.00390625, %v77_v17 }
  0xb0   :  { %v263_v57 = vrot.slane %v130_v63, %v1011_v62  ;;  %v1034_v63 = vsub.s32 %v242_v44, %v1001_v50 }
  0xb1   :  { %v104_v22 = vpop.xlane.xlu1 %103  ;;  %v211_v10 = vrot.slane %v122_v42, %v1011_v62 }
  0xb2   :  { %v80_v23 = vpop.xlane.xlu0 %79  ;;  %v131_v36 = vmul.f32 0.00390625, %v104_v22  ;;  %v1026_v22 = vsub.s32 %v228_v53, %v1001_v50  ;;  %v1040_v53 = vsub.s32 %v249_v16, %v1001_v50 }
  0xb3   :  { %v123_v18 = vmul.f32 0.00390625, %v80_v23  ;;  %v259_v23 = vrot.slane %v129_v37, %v1008_v60 }
  0xb5   :  { %v107_v24 = vpop.xlane.xlu1 %106  ;;  %v218_v6 = vrot.slane %v123_v18, %v1014_v3 }
  0xb6   :  { %v83_v25 = vpop.xlane.xlu0 %82  ;;  %v132_v56 = vmul.f32 0.00390625, %v107_v24  ;;  %v268_v24 = vrot.slane %v131_v36, %v1014_v3 }
  0xb7   :  { %v124_v28 = vmul.f32 0.00390625, %v83_v25  ;;  %v206_v25 = vrot.slane %v121_v19, %v1008_v60 }
  0xb8   :  { %v273_v42 = vrot.slane %v132_v56, %v1017_v45 }
  0xb9   :  { %v989_v26 = vpop.xlane.xlu1 %141  ;;  %v225_v37 = vrot.slane %v124_v28, %v1017_v45  ;;  %v213_v18 = vsel %vm212_vm2, %v211_v10, %v206_v25 }
  0xba   :  { %v991_v27 = vpop.xlane.xlu0 %138  ;;  %v321_v36 = vrot.slane %v989_v26, %v1011_v62 }
  0xbb   :  { %v317_v44 = vrot.slane %v991_v27, %v1008_v60  ;;  %v220_v27 = vsel %vm219_vm3, %v218_v6, %v213_v18 }
  0xbd   :  { %v993_v32 = vpop.xlane.xlu1 %165 }
  0xbe   :  { %v995_v33 = vpop.xlane.xlu0 %162 }
  0xbf   :  { %v356_v56 = vrot.slane %v995_v33, %v1008_v60  ;;  %v322_v33 = vsel %vm212_vm2, %v321_v36, %v317_v44 }
  0xc1   :  { %v110_v34 = vpop.xlane.xlu1 %109 }
  0xc2   :  { %v86_v35 = vpop.xlane.xlu0 %85  ;;  %v133_v59 = vmul.f32 0.00390625, %v110_v34  ;;  %v264_v34 = vsel %vm212_vm2, %v263_v57, %v259_v23 }
  0xc3   :  { %v125_v49 = vmul.f32 0.00390625, %v86_v35  ;;  %v360_v35 = vrot.slane %v993_v32, %v1011_v62  ;;  %v269_v28 = vsel %vm219_vm3, %v268_v24, %v264_v34  ;;  %v227_v32 = vsel %vm226_vm4, %v225_v37, %v220_v27 }
  0xc4   :  { %v278_v16 = vrot.slane %v133_v59, %v1026_v22  ;;  %v274_v5 = vsel %vm226_vm4, %v273_v42, %v269_v28 }
  0xc5   :  { %v997_v40 = vpop.xlane.xlu1 %168  ;;  %v232_v26 = vrot.slane %v125_v49, %v1026_v22  ;;  %v361_v24 = vsel %vm212_vm2, %v360_v35, %v356_v56 }
  0xc6   :  { %v999_v41 = vpop.xlane.xlu0 %144  ;;  %v365_v60 = vrot.slane %v997_v40, %v1014_v3 }
  0xc7   :  { %v326_v6 = vrot.slane %v999_v41, %v1014_v3 }
  0xc8   :  { %v366_v34 = vsel %vm219_vm3, %v365_v60, %v361_v24 }
  0xc9   :  { %v113_v43 = vpop.xlane.xlu1 %112 }
  0xca   :  { %v89_v48 = vpop.xlane.xlu0 %88  ;;  %v134_v57 = vmul.f32 0.00390625, %v113_v43  ;;  %v279_v43 = vsel %vm233_vm5, %v278_v16, %v274_v5 }
  0xcb   :  { %v126_v23 = vmul.f32 0.00390625, %v89_v48 }
  0xcd   :  { %v1003_v51 = vpop.xlane.xlu1 %171  ;;  %v239_v49 = vrot.slane %v126_v23, %v1029_v11 }
  0xce   :  { %v1005_v58 = vpop.xlane.xlu0 %147  ;;  %v370_v40 = vrot.slane %v1003_v51, %v1017_v45 }
  0xcf   :  { %v331_v42 = vrot.slane %v1005_v58, %v1017_v45  ;;  %v327_v45 = vsel %vm219_vm3, %v326_v6, %v322_v33 }
  0xd0   :  { %v371_v56 = vsel %vm226_vm4, %v370_v40, %v366_v34 }
  0xd1   :  { %v116_v61 = vpop.xlane.xlu1 %115 }
  0xd2   :  { %v92_v7 = vpop.xlane.xlu0 %91  ;;  %v135_v10 = vmul.f32 0.00390625, %v116_v61  ;;  %v234_v61 = vsel %vm233_vm5, %v232_v26, %v227_v32 }
  0xd3   :  { %v127_v25 = vmul.f32 0.00390625, %v92_v7  ;;  %v283_v7 = vrot.slane %v134_v57, %v1029_v11  ;;  %v241_v35 = vsel %vm240_vm6, %v239_v49, %v234_v61  ;;  %v727_v61 = vld [vmem:[#allocation5 + $0x9] ss:$0 sm:$0xff] }
  0xd4   :  { %v288_v5 = vrot.slane %v135_v10, %v1034_v63 }
  0xd5   :  { %v1019_v29 = vpop.xlane.xlu1 %174 }
  0xd6   :  { %v1022_v17 = vpop.xlane.xlu0 %150  ;;  %v375_v41 = vrot.slane %v1019_v29, %v1026_v22  ;;  %v284_v29 = vsel %vm240_vm6, %v283_v7, %v279_v43 }
  0xd7   :  { %v336_v37 = vrot.slane %v1022_v17, %v1026_v22  ;;  %v332_v22 = vsel %vm226_vm4, %v331_v42, %v327_v45  ;;  %v730_v42 = vld [vmem:[#allocation5 + $0x8] ss:$0 sm:$0xff] }
  0xd8   :  { %v376_v28 = vsel %vm233_vm5, %v375_v41, %v371_v56 }
  0xd9   :  { %v119_v52 = vpop.xlane.xlu1 %118 }
  0xda   :  { %v95_v19 = vpop.xlane.xlu0 %94  ;;  %v136_v62 = vmul.f32 0.00390625, %v119_v52  ;;  %v246_v52 = vrot.slane %v127_v25, %v1034_v63 }
  0xdb   :  { %v128_v48 = vmul.f32 0.00390625, %v95_v19 }
  0xdc   :  { %v293_v36 = vrot.slane %v136_v62, %v1040_v53  ;;  %v248_v16 = vsel %vm247_vm7, %v246_v52, %v241_v35 }
  0xdd   :  { %v178_v13 = vpop.xlane.xlu1 %177  ;;  %v253_v58 = vrot.slane %v128_v48, %v1040_v53  ;;  %v398_v48 = vld [vmem:[#allocation5 + $0x4] sm:$0xf] }
  0xde   :  { %v154_v59 = vpop.xlane.xlu0 %153  ;;  %v380_v51 = vrot.slane %v178_v13, %v1029_v11  ;;  %v289_v13 = vsel %vm247_vm7, %v288_v5, %v284_v29  ;;  %744 = vmatpush3.msk.msra.mxu1 %vm491_vm12, %v398_v48 }
  0xdf   :  { %v341_v19 = vrot.slane %v154_v59, %v1029_v11  ;;  %v337_v11 = vsel %vm233_vm5, %v336_v37, %v332_v22  ;;  %v294_v57 = vsel %vm254_vm8, %v293_v36, %v289_v13 }
  0xe0   :  { %v381_v23 = vsel %vm240_vm6, %v380_v51, %v376_v28 }
  0xe1   :  { %v181_v3 = vpop.xlane.xlu1 %180  ;;  %v342_v25 = vsel %vm240_vm6, %v341_v19, %v337_v11  ;;  %v612_v19 = vsub.s32 1, %v1001_v50 }
  0xe2   :  { %v157_v44 = vpop.xlane.xlu0 %156  ;;  %v385_v18 = vrot.slane %v181_v3, %v1034_v63 }
  0xe3   :  { %v346_v17 = vrot.slane %v157_v44, %v1034_v63  ;;  %v255_v63 = vsel %vm254_vm8, %v253_v58, %v248_v16  ;;  %v577_v44 = vsub.s32 0, %v1001_v50 }
  0xe4   :  { %v386_v32 = vsel %vm247_vm7, %v385_v18, %v381_v23  ;;  %v296_v24 = vsel %vm295_vm9, %v294_v57, %v255_v63 }
  0xe5   :  { %v184_v26 = vpop.xlane.xlu1 %183  ;;  %v347_v60 = vsel %vm247_vm7, %v346_v17, %v342_v25 }
  0xe6   :  { %v390_v27 = vrot.slane %v184_v26, %v1040_v53  ;;  %v160_v10 = vpop.xlane.xlu0 %159 }
  0xe7   :  { %v351_v33 = vrot.slane %v160_v10, %v1040_v53 }
  0xe8   :  { %v391_v62 = vsel %vm254_vm8, %v390_v27, %v386_v32  ;;  %v1177_v32 = vld [vmem:[#allocation13_spill] sm:$0xff] }
  0xe9   :  { %v352_v59 = vsel %vm254_vm8, %v351_v33, %v347_v60  ;;  %v1179_v60 = vld [vmem:[#allocation12_spill] sm:$0xff] }
  0xea   :  { %v393_v43 = vsel %vm392_vm10, %v391_v62, %v352_v59  ;;  %v1180_v59 = vld [vmem:[#allocation16_spill] sm:$0xff] }
  0xeb   :  { %v396_v6 = vsel %vm395_vm11, %v296_v24, %v393_v43  ;;  %v1181_v43 = vld [vmem:[#allocation17_spill] sm:$0xff] }
  0xec   :  { %741 = vmatmul.mubr.msk.f32.vlgmr.msra.gmra.mxu0 %vm405_vm0, %v396_v6  ;;  %v1182_v6 = vld [vmem:[#allocation14_spill] sm:$0xff] }
 0x1ac   :  { %v478_v7 = vpop.f32.mrf.mxu0 }
 0x1ad   :  { %v479_v53 = vadd.f32 %v727_v61, %v478_v7  ;;  %v1183_v61 = vld [vmem:[#allocation15_spill] sm:$0xff] }
 0x1ae   :  { %v742_v49 = vpop.f32.mrf.mxu0 }
 0x1af   :  { %v482_v40 = vmax.f32 %v479_v53, 0.0  ;;  %v1184_v53 = vld [vmem:[#allocation20_spill] sm:$0xff] }
 0x1b1   :  { %746 = vmatmul.mubr.msk.f32.vlgmr.msra.gmra.mxu1 %vm487_vm13, %v482_v40  ;;  %v1185_v40 = vld [vmem:[#allocation21_spill] sm:$0xff] }
 0x271   :  { %v561_v5 = vpop.f32.mrf.mxu1 }
 0x272   :  { %v562_v52 = vadd.f32 %v730_v42, %v561_v5 }
 0x273   :  { %v747_v41 = vpop.f32.mrf.mxu1 }
 0x274   :  { %v566_v3 = vrot.slane %v562_v52, 2 }
 0x276   :  { %v568_v34 = vadd.f32 %v566_v3, %v562_v52  ;;  %v1186_v52 = vld [vmem:[#allocation18_spill] sm:$0xff]  ;;  %v1187_v3 = vld [vmem:[#allocation19_spill] sm:$0xff] }
 0x278   :  { %v733_v37 = vmul.f32 -1.442695, %v568_v34 }
 0x27a   :  { %757 = vpow2.f32 %v733_v37 }
 0x287   :  { %v758_v36 = vpop.eup %757 }
 0x288   :  { %v572_v51 = vadd.f32 1.0, %v758_v36  ;;  %v1188_v36 = vld [vmem:[#allocation22_spill] sm:$0xff] }
 0x28a   :  { %759 = vrcp.f32 %v572_v51 }
 0x297   :  { %v760_v45 = vpop.eup %759 }
 0x298   :  { %v578_v58 = vrot.slane %v760_v45, %v577_v44  ;;  %v613_v18 = vrot.slane %v760_v45, %v612_v19  ;;  %v1189_v44 = vld [vmem:[#allocation23_spill] sm:$0xff] }
 0x29a   :  { %584 = vbcast.lane.b32.xlu1 %v578_v58, 264  ;;  %580 = vbcast.lane.b32.xlu0 %v578_v58, 256 }
 0x29e   :  { %588 = vbcast.lane.b32.xlu1 %v578_v58, 272  ;;  %596 = vbcast.lane.b32.xlu0 %v578_v58, 288 }
 0x2a2   :  { %592 = vbcast.lane.b32.xlu1 %v578_v58, 280  ;;  %604 = vbcast.lane.b32.xlu0 %v578_v58, 304 }
 0x2a6   :  { %600 = vbcast.lane.b32.xlu1 %v578_v58, 296  ;;  %615 = vbcast.lane.b32.xlu0 %v613_v18, 256 }
 0x2aa   :  { %608 = vbcast.lane.b32.xlu1 %v578_v58, 312  ;;  %623 = vbcast.lane.b32.xlu0 %v613_v18, 272 }
 0x2ae   :  { %619 = vbcast.lane.b32.xlu1 %v613_v18, 264  ;;  %631 = vbcast.lane.b32.xlu0 %v613_v18, 288 }
 0x2b2   :  { %627 = vbcast.lane.b32.xlu1 %v613_v18, 280  ;;  %639 = vbcast.lane.b32.xlu0 %v613_v18, 304 }
 0x2b6   :  { %635 = vbcast.lane.b32.xlu1 %v613_v18, 296 }
 0x2ba   :  { %643 = vbcast.lane.b32.xlu1 %v613_v18, 312 }
 0x30c   :  { %v585_v29 = vpop.permute.xlu1 %584  ;;  %v581_v35 = vpop.permute.xlu0 %580 }
 0x30d   :  { %v647_v56 = vmul.f32 %v585_v29, %v876_v8  ;;  %v648_v17 = vmul.f32 %v585_v29, %v878_v9  ;;  %v645_v50 = vmul.f32 %v581_v35, %v864_v2  ;;  %v646_v22 = vmul.f32 %v581_v35, %v868_v4 }
 0x30f   :  { %679 = vst [vmem:[#allocation7 + $0x10] sm:$0xff] %v647_v56  ;;  %680 = vst [vmem:[#allocation7 + $0x18] sm:$0xff] %v648_v17 }
 0x310   :  { %677 = vst [vmem:[#allocation7] sm:$0xff] %v645_v50  ;;  %678 = vst [vmem:[#allocation7 + $0x8] sm:$0xff] %v646_v22  ;;  %v589_v13 = vpop.permute.xlu1 %588  ;;  %v597_v16 = vpop.permute.xlu0 %596 }
 0x311   :  { %v649_v28 = vmul.f32 %v589_v13, %v888_v14  ;;  %v650_v26 = vmul.f32 %v589_v13, %v890_v15  ;;  %v653_v11 = vmul.f32 %v597_v16, %v920_v30  ;;  %v654_v8 = vmul.f32 %v597_v16, %v922_v31 }
 0x313   :  { %681 = vst [vmem:[#allocation7 + $0x20] sm:$0xff] %v649_v28  ;;  %682 = vst [vmem:[#allocation7 + $0x28] sm:$0xff] %v650_v26 }
 0x314   :  { %685 = vst [vmem:[#allocation7 + $0x40] sm:$0xff] %v653_v11  ;;  %686 = vst [vmem:[#allocation7 + $0x48] sm:$0xff] %v654_v8  ;;  %v593_v2 = vpop.permute.xlu1 %592  ;;  %v605_v4 = vpop.permute.xlu0 %604 }
 0x315   :  { %v651_v9 = vmul.f32 %v593_v2, %v900_v20  ;;  %v652_v57 = vmul.f32 %v593_v2, %v902_v21  ;;  %v657_v23 = vmul.f32 %v605_v4, %v952_v46  ;;  %v658_v14 = vmul.f32 %v605_v4, %v954_v47 }
 0x317   :  { %683 = vst [vmem:[#allocation7 + $0x30] sm:$0xff] %v651_v9  ;;  %684 = vst [vmem:[#allocation7 + $0x38] sm:$0xff] %v652_v57 }
 0x318   :  { %689 = vst [vmem:[#allocation7 + $0x60] sm:$0xff] %v657_v23  ;;  %690 = vst [vmem:[#allocation7 + $0x68] sm:$0xff] %v658_v14  ;;  %v601_v15 = vpop.permute.xlu1 %600  ;;  %v616_v30 = vpop.permute.xlu0 %615 }
 0x319   :  { %v655_v31 = vmul.f32 %v601_v15, %v936_v38  ;;  %v656_v27 = vmul.f32 %v601_v15, %v938_v39  ;;  %v661_v10 = vmul.f32 %v616_v30, %v860_v0  ;;  %v662_v20 = vmul.f32 %v616_v30, %v862_v1  ;;  %v1178_v39 = vld [vmem:[#allocation11_spill] sm:$0xff] }
 0x31b   :  { %687 = vst [vmem:[#allocation7 + $0x50] sm:$0xff] %v655_v31  ;;  %688 = vst [vmem:[#allocation7 + $0x58] sm:$0xff] %v656_v27 }
 0x31c   :  { %693 = vst [vmem:[#allocation7 + $0x80] sm:$0xff] %v661_v10  ;;  %694 = vst [vmem:[#allocation7 + $0x88] sm:$0xff] %v662_v20  ;;  %v609_v21 = vpop.permute.xlu1 %608  ;;  %v624_v46 = vpop.permute.xlu0 %623 }
 0x31d   :  { %v659_v47 = vmul.f32 %v609_v21, %v968_v54  ;;  %v660_v63 = vmul.f32 %v609_v21, %v970_v55  ;;  %v665_v25 = vmul.f32 %v624_v46, %v884_v12  ;;  %v666_v38 = vmul.f32 %v624_v46, %v1177_v32 }
 0x31f   :  { %691 = vst [vmem:[#allocation7 + $0x70] sm:$0xff] %v659_v47  ;;  %692 = vst [vmem:[#allocation7 + $0x78] sm:$0xff] %v660_v63 }
 0x320   :  { %697 = vst [vmem:[#allocation7 + $0xa0] sm:$0xff] %v665_v25  ;;  %698 = vst [vmem:[#allocation7 + $0xa8] sm:$0xff] %v666_v38  ;;  %v620_v0 = vpop.permute.xlu1 %619  ;;  %v632_v1 = vpop.permute.xlu0 %631 }
 0x321   :  { %v663_v33 = vmul.f32 %v620_v0, %v1178_v39  ;;  %v664_v62 = vmul.f32 %v620_v0, %v1179_v60  ;;  %v669_v24 = vmul.f32 %v632_v1, %v1180_v59  ;;  %v670_v54 = vmul.f32 %v632_v1, %v1181_v43 }
 0x323   :  { %695 = vst [vmem:[#allocation7 + $0x90] sm:$0xff] %v663_v33  ;;  %696 = vst [vmem:[#allocation7 + $0x98] sm:$0xff] %v664_v62 }
 0x324   :  { %701 = vst [vmem:[#allocation7 + $0xc0] sm:$0xff] %v669_v24  ;;  %702 = vst [vmem:[#allocation7 + $0xc8] sm:$0xff] %v670_v54  ;;  %v628_v12 = vpop.permute.xlu1 %627  ;;  %v640_v55 = vpop.permute.xlu0 %639 }
 0x325   :  { %v667_v48 = vmul.f32 %v628_v12, %v1182_v6  ;;  %v668_v7 = vmul.f32 %v628_v12, %v1183_v61  ;;  %v673_v49 = vmul.f32 %v640_v55, %v1184_v53  ;;  %v674_v42 = vmul.f32 %v640_v55, %v1185_v40 }
 0x327   :  { %699 = vst [vmem:[#allocation7 + $0xb0] sm:$0xff] %v667_v48  ;;  %700 = vst [vmem:[#allocation7 + $0xb8] sm:$0xff] %v668_v7 }
 0x328   :  { %705 = vst [vmem:[#allocation7 + $0xe0] sm:$0xff] %v673_v49  ;;  %706 = vst [vmem:[#allocation7 + $0xe8] sm:$0xff] %v674_v42  ;;  %v636_v5 = vpop.permute.xlu1 %635 }
 0x329   :  { %v671_v41 = vmul.f32 %v636_v5, %v1186_v52  ;;  %v672_v34 = vmul.f32 %v636_v5, %v1187_v3 }
 0x32b   :  { %703 = vst [vmem:[#allocation7 + $0xd0] sm:$0xff] %v671_v41  ;;  %704 = vst [vmem:[#allocation7 + $0xd8] sm:$0xff] %v672_v34 }
 0x32c   :  { %v644_v37 = vpop.permute.xlu1 %643 }
 0x32d   :  { %v675_v51 = vmul.f32 %v644_v37, %v1188_v36  ;;  %v676_v45 = vmul.f32 %v644_v37, %v1189_v44 }
 0x32f   :  { %707 = vst [vmem:[#allocation7 + $0xf0] sm:$0xff] %v675_v51  ;;  %708 = vst [vmem:[#allocation7 + $0xf8] sm:$0xff] %v676_v45 }
 0x330   :  { %812 = shalt.err (!%p809_p0)
}
 0x331   :  { %720 = dma.vmem_to_hbm [thread:$0]  %s715_s1, 4096, %s1150_s2, [#allocation4], %s828_s12, %s828_s12, %s829_s13  }
 0x332   :  { %825 = dma.done.wait [#allocation4], 4096  }
 0x333   :  { %826 = vsyncadd [#allocation4], 4294963200 }
 0x334   :  { %724 = vsyncpa [#allocation3], 1 }
 0x335   :  { %725 = vsyncpa [#allocation6], 1 }
 0x336   :  { %726 = vsyncpa [#allocation4], 1 }

</bundles_post_ra>
